<compile_context>
chip_gen: v6e
topology: v6e:2x2x1
jax: 0.10.0
libtpu: 0.0.40
codegen_flags: <defaults>
</compile_context>

<pallas_src>
import functools

import jax
import jax.numpy as jnp
from jax.experimental import pallas as pl
from jax.experimental.pallas import tpu as pltpu

LANE = 128
SUBLANE = 8


def _round_up(n, m):
    return ((n + m - 1) // m) * m


def _mlp_kernel(x_ref, w1_ref, b1_ref, w2_ref, b2_ref, w3_ref, b3_ref,
                y_ref, h2_ref):
    # x tile (TM, Kp) bf16; weights bf16 (lane-padded); biases f32 (1, N).
    # Three MXU matmuls with f32 accumulation, bias+ReLU fused on the VPU.
    h1 = jnp.dot(x_ref[...], w1_ref[...], preferred_element_type=jnp.float32)
    h1 = jnp.maximum(h1 + b1_ref[...], 0.0)

    h2 = jnp.dot(h1.astype(jnp.bfloat16), w2_ref[...],
                 preferred_element_type=jnp.float32)
    h2 = jnp.maximum(h2 + b2_ref[...], 0.0)

    y = jnp.dot(h2.astype(jnp.bfloat16), w3_ref[...],
                preferred_element_type=jnp.float32)
    y = y + b3_ref[...]

    y_ref[...] = y.astype(y_ref.dtype)
    h2_ref[...] = h2.astype(h2_ref.dtype)


@functools.partial(jax.jit, static_argnames=("out_dim", "h2_dim", "tm"))
def mlp_forward(x, w1, b1, w2, b2, w3, b3, *, out_dim, h2_dim, tm=512):
    """Forward pass. x: [B, C, H, W] (or already [B, input_dim]).

    w*/b* are the lane-padded params from pack_params().
    Returns (y_pred [B, out_dim] f32, h2 [B, h2_dim] f32) -- matching the
    PyTorch module's (y_pred, h_2).
    """
    batch = x.shape[0]
    x2d = x.reshape(batch, -1)                # == x.view(batch_size, -1)
    in_dim = x2d.shape[1]

    kp = w1.shape[0]                          # padded input dim
    h1p = w1.shape[1]                         # 256
    h2p = w2.shape[1]                         # 128
    op = w3.shape[1]                          # 128

    # Batch tiling: pad batch to >= 8 (sublane) and tile M at `tm` rows.
    tile_m = tm if batch >= tm else _round_up(max(batch, SUBLANE), SUBLANE)
    padded_batch = _round_up(batch, tile_m)

    # Pad activations (rows -> padded batch, cols -> padded K); MXU operands
    # are bf16, accumulation is f32 inside the kernel.
    xb = x2d.astype(jnp.bfloat16)
    xb = jnp.pad(xb, ((0, padded_batch - batch), (0, kp - in_dim)))

    grid = (padded_batch // tile_m,)

    flops = 2 * padded_batch * (kp * h1p + h1p * h2p + h2p * op)
    bytes_accessed = (
        xb.size * 2
        + (w1.size + w2.size + w3.size) * 2
        + (b1.size + b2.size + b3.size) * 4
        + padded_batch * (op + h2p) * 4
    )

    y_pad, h2_pad = pl.pallas_call(
        _mlp_kernel,
        out_shape=(
            jax.ShapeDtypeStruct((padded_batch, op), jnp.float32),
            jax.ShapeDtypeStruct((padded_batch, h2p), jnp.float32),
        ),
        grid_spec=pltpu.PrefetchScalarGridSpec(
            num_scalar_prefetch=0,
            grid=grid,
            in_specs=[
                pl.BlockSpec((tile_m, kp), lambda i: (i, 0)),   # x batch tile
                pl.BlockSpec((kp, h1p), lambda i: (0, 0)),      # W1 (resident)
                pl.BlockSpec((1, h1p), lambda i: (0, 0)),       # b1
                pl.BlockSpec((h1p, h2p), lambda i: (0, 0)),     # W2
                pl.BlockSpec((1, h2p), lambda i: (0, 0)),       # b2
                pl.BlockSpec((h2p, op), lambda i: (0, 0)),      # W3
                pl.BlockSpec((1, op), lambda i: (0, 0)),        # b3
            ],
            out_specs=(
                pl.BlockSpec((tile_m, op), lambda i: (i, 0)),   # y slab
                pl.BlockSpec((tile_m, h2p), lambda i: (i, 0)),  # h2 slab
            ),
        ),
        compiler_params=pltpu.CompilerParams(
            # Batch tiles are independent -> shard across TCs on v7x megacore.
            dimension_semantics=("parallel",),
            vmem_limit_bytes=32 * 1024 * 1024,
        ),
        cost_estimate=pl.CostEstimate(
            flops=flops, transcendentals=0, bytes_accessed=bytes_accessed),
    )(xb, w1, b1, w2, b2, w3, b3)

    # Slice the lane-dense padded slabs back to the logical widths.
    return y_pad[:batch, :out_dim], h2_pad[:batch, :h2_dim]


def init_mlp_params(key, input_dim, output_dim, dtype=jnp.float32):
    """Logical (unpadded, f32) params mimicking nn.Linear default init.

    Weights stored as [in_features, out_features] so the kernel does x @ W.
    """
    def linear(k, fan_in, fan_out):
        kw, kb = jax.random.split(k)
        bound = 1.0 / jnp.sqrt(jnp.float32(fan_in))
        w = jax.random.uniform(kw, (fan_in, fan_out), dtype, -bound, bound)
        b = jax.random.uniform(kb, (1, fan_out), dtype, -bound, bound)
        return w, b

    k1, k2, k3 = jax.random.split(key, 3)
    w1, b1 = linear(k1, input_dim, 250)
    w2, b2 = linear(k2, 250, 100)
    w3, b3 = linear(k3, 100, output_dim)
    return w1, b1, w2, b2, w3, b3


def pack_params(params):
    """Zero-pad every feature dim to a multiple of 128; weights -> bf16."""
    w1, b1, w2, b2, w3, b3 = params

    def pad2(a, rows, cols, dt):
        return jnp.pad(
            a, ((0, rows - a.shape[0]), (0, cols - a.shape[1]))).astype(dt)

    kp = _round_up(w1.shape[0], LANE)
    h1p = _round_up(w1.shape[1], LANE)
    h2p = _round_up(w2.shape[1], LANE)
    op = _round_up(w3.shape[1], LANE)
    return (
        pad2(w1, kp, h1p, jnp.bfloat16), pad2(b1, 1, h1p, jnp.float32),
        pad2(w2, h1p, h2p, jnp.bfloat16), pad2(b2, 1, h2p, jnp.float32),
        pad2(w3, h2p, op, jnp.bfloat16), pad2(b3, 1, op, jnp.float32),
    )


if __name__ == "__main__":
    key = jax.random.PRNGKey(0)
    k_x, k_p = jax.random.split(key)

    # Small MNIST-like example: batch=2, 4 channels, 16x16 spatial.
    B, C, H, W = 2, 4, 16, 16
    input_dim = C * H * W                     # 1024 after x.view(B, -1)
    output_dim = 10

    x = jax.random.normal(k_x, (B, C, H, W), dtype=jnp.float32)
    params = init_mlp_params(k_p, input_dim, output_dim)
    packed = pack_params(params)

    y_pred, h2 = mlp_forward(x, *packed, out_dim=output_dim, h2_dim=100)
    jax.block_until_ready((y_pred, h2))

    assert y_pred.shape == (B, output_dim) and h2.shape == (B, 100)

    # Reference 1: identical bf16-operand / f32-accumulate math in plain JAX.
    w1, b1, w2, b2, w3, b3 = params
    x2d = x.reshape(B, -1)

    def bdot(a, w):
        return jnp.dot(a.astype(jnp.bfloat16), w.astype(jnp.bfloat16),
                       preferred_element_type=jnp.float32)

    h1_ref = jnp.maximum(bdot(x2d, w1) + b1, 0.0)
    h2_ref = jnp.maximum(bdot(h1_ref, w2) + b2, 0.0)
    y_ref = bdot(h2_ref, w3) + b3
    assert jnp.allclose(y_pred, y_ref, atol=2e-3, rtol=2e-3)
    assert jnp.allclose(h2, h2_ref, atol=2e-3, rtol=2e-3)

    # Reference 2: full-f32 PyTorch-equivalent math (loose tol for bf16 dots).
    h1_f = jnp.maximum(x2d @ w1 + b1, 0.0)
    h2_f = jnp.maximum(h1_f @ w2 + b2, 0.0)
    y_f = h2_f @ w3 + b3
    assert jnp.allclose(y_pred, y_f, atol=1e-1, rtol=1e-1)
    assert jnp.allclose(h2, h2_f, atol=1e-1, rtol=1e-1)

    print("KERNEL_OK")
</pallas_src>

<mosaic_0001>
module attributes {stable_mosaic.version = 11 : i64} {
  func.func @_mlp_kernel(%arg0: i32, %arg1: memref<8x1024xbf16, #tpu.memory_space<vmem>>, %arg2: memref<1024x256xbf16, #tpu.memory_space<vmem>>, %arg3: memref<1x256xf32, #tpu.memory_space<vmem>>, %arg4: memref<256x128xbf16, #tpu.memory_space<vmem>>, %arg5: memref<1x128xf32, #tpu.memory_space<vmem>>, %arg6: memref<128x128xbf16, #tpu.memory_space<vmem>>, %arg7: memref<1x128xf32, #tpu.memory_space<vmem>>, %arg8: memref<8x128xf32, #tpu.memory_space<vmem>>, %arg9: memref<8x128xf32, #tpu.memory_space<vmem>>) attributes {dimension_semantics = [#tpu.dimension_semantics<parallel>], iteration_bounds = array<i64: 1>, scalar_prefetch = 0 : i64, scratch_operands = 0 : i64, tpu.core_type = #tpu.core_type<tc>, window_params = [{transform_indices = @transform_0, window_bounds = array<i64: 8, 1024>}, {pipeline_mode = #tpu.pipeline_mode<synchronous>, transform_indices = @transform_1, window_bounds = array<i64: 1024, 256>}, {pipeline_mode = #tpu.pipeline_mode<synchronous>, transform_indices = @transform_2, window_bounds = array<i64: 1, 256>}, {pipeline_mode = #tpu.pipeline_mode<synchronous>, transform_indices = @transform_3, window_bounds = array<i64: 256, 128>}, {pipeline_mode = #tpu.pipeline_mode<synchronous>, transform_indices = @transform_4, window_bounds = array<i64: 1, 128>}, {pipeline_mode = #tpu.pipeline_mode<synchronous>, transform_indices = @transform_5, window_bounds = array<i64: 128, 128>}, {pipeline_mode = #tpu.pipeline_mode<synchronous>, transform_indices = @transform_6, window_bounds = array<i64: 1, 128>}, {transform_indices = @transform_7, window_bounds = array<i64: 8, 128>}, {transform_indices = @transform_8, window_bounds = array<i64: 8, 128>}]} {
    %c0 = arith.constant 0 : index
    %c0_0 = arith.constant 0 : index
    %0 = vector.load %arg1[%c0, %c0_0] : memref<8x1024xbf16, #tpu.memory_space<vmem>>, vector<8x1024xbf16>
    %c0_1 = arith.constant 0 : index
    %c0_2 = arith.constant 0 : index
    %1 = vector.load %arg2[%c0_1, %c0_2] : memref<1024x256xbf16, #tpu.memory_space<vmem>>, vector<1024x256xbf16>
    %cst = arith.constant dense<0.000000e+00> : vector<8x256xf32>
    %2 = tpu.matmul %0, %1, %cst {dimension_numbers = #tpu.dot_dimension_numbers<[1], [0], [0], [1], [0, 0, 1, 1], [], []>} : vector<8x1024xbf16>, vector<1024x256xbf16>, vector<8x256xf32> -> vector<8x256xf32>
    %c0_3 = arith.constant 0 : index
    %c0_4 = arith.constant 0 : index
    %3 = vector.load %arg3[%c0_3, %c0_4] : memref<1x256xf32, #tpu.memory_space<vmem>>, vector<1x256xf32>
    %4 = vector.broadcast %3 : vector<1x256xf32> to vector<8x256xf32>
    %5 = arith.addf %2, %4 : vector<8x256xf32>
    %cst_5 = arith.constant 0.000000e+00 : f32
    %6 = vector.broadcast %cst_5 : f32 to vector<8x256xf32>
    %7 = arith.maximumf %5, %6 : vector<8x256xf32>
    %8 = arith.truncf %7 : vector<8x256xf32> to vector<8x256xbf16>
    %c0_6 = arith.constant 0 : index
    %c0_7 = arith.constant 0 : index
    %9 = vector.load %arg4[%c0_6, %c0_7] : memref<256x128xbf16, #tpu.memory_space<vmem>>, vector<256x128xbf16>
    %cst_8 = arith.constant dense<0.000000e+00> : vector<8x128xf32>
    %10 = tpu.matmul %8, %9, %cst_8 {dimension_numbers = #tpu.dot_dimension_numbers<[1], [0], [0], [1], [0, 0, 1, 1], [], []>} : vector<8x256xbf16>, vector<256x128xbf16>, vector<8x128xf32> -> vector<8x128xf32>
    %c0_9 = arith.constant 0 : index
    %c0_10 = arith.constant 0 : index
    %11 = vector.load %arg5[%c0_9, %c0_10] : memref<1x128xf32, #tpu.memory_space<vmem>>, vector<1x128xf32>
    %12 = vector.broadcast %11 : vector<1x128xf32> to vector<8x128xf32>
    %13 = arith.addf %10, %12 : vector<8x128xf32>
    %cst_11 = arith.constant 0.000000e+00 : f32
    %14 = vector.broadcast %cst_11 : f32 to vector<8x128xf32>
    %15 = arith.maximumf %13, %14 : vector<8x128xf32>
    %16 = arith.truncf %15 : vector<8x128xf32> to vector<8x128xbf16>
    %c0_12 = arith.constant 0 : index
    %c0_13 = arith.constant 0 : index
    %17 = vector.load %arg6[%c0_12, %c0_13] : memref<128x128xbf16, #tpu.memory_space<vmem>>, vector<128x128xbf16>
    %cst_14 = arith.constant dense<0.000000e+00> : vector<8x128xf32>
    %18 = tpu.matmul %16, %17, %cst_14 {dimension_numbers = #tpu.dot_dimension_numbers<[1], [0], [0], [1], [0, 0, 1, 1], [], []>} : vector<8x128xbf16>, vector<128x128xbf16>, vector<8x128xf32> -> vector<8x128xf32>
    %c0_15 = arith.constant 0 : index
    %c0_16 = arith.constant 0 : index
    %19 = vector.load %arg7[%c0_15, %c0_16] : memref<1x128xf32, #tpu.memory_space<vmem>>, vector<1x128xf32>
    %20 = vector.broadcast %19 : vector<1x128xf32> to vector<8x128xf32>
    %21 = arith.addf %18, %20 : vector<8x128xf32>
    %c0_17 = arith.constant 0 : index
    %c0_18 = arith.constant 0 : index
    %22 = vector.load %arg8[%c0_17, %c0_18] : memref<8x128xf32, #tpu.memory_space<vmem>>, vector<8x128xf32>
    tpu.vector_store %arg8[%c0_17, %c0_18], %21 {strides = array<i32>} : memref<8x128xf32, #tpu.memory_space<vmem>>, vector<8x128xf32>,
    %c0_19 = arith.constant 0 : index
    %c0_20 = arith.constant 0 : index
    %23 = vector.load %arg9[%c0_19, %c0_20] : memref<8x128xf32, #tpu.memory_space<vmem>>, vector<8x128xf32>
    tpu.vector_store %arg9[%c0_19, %c0_20], %15 {strides = array<i32>} : memref<8x128xf32, #tpu.memory_space<vmem>>, vector<8x128xf32>,
    return
  }
  func.func @transform_0(%arg0: i32) -> (i32, i32) {
    %c0_i32 = arith.constant 0 : i32
    %c0_i32_0 = arith.constant 0 : i32
    return %arg0, %c0_i32 : i32, i32
  }
  func.func @transform_1(%arg0: i32) -> (i32, i32) {
    %c0_i32 = arith.constant 0 : i32
    %c0_i32_0 = arith.constant 0 : i32
    %c0_i32_1 = arith.constant 0 : i32
    return %c0_i32, %c0_i32_0 : i32, i32
  }
  func.func @transform_2(%arg0: i32) -> (i32, i32) {
    %c0_i32 = arith.constant 0 : i32
    %c0_i32_0 = arith.constant 0 : i32
    %c0_i32_1 = arith.constant 0 : i32
    return %c0_i32, %c0_i32_0 : i32, i32
  }
  func.func @transform_3(%arg0: i32) -> (i32, i32) {
    %c0_i32 = arith.constant 0 : i32
    %c0_i32_0 = arith.constant 0 : i32
    %c0_i32_1 = arith.constant 0 : i32
    return %c0_i32, %c0_i32_0 : i32, i32
  }
  func.func @transform_4(%arg0: i32) -> (i32, i32) {
    %c0_i32 = arith.constant 0 : i32
    %c0_i32_0 = arith.constant 0 : i32
    %c0_i32_1 = arith.constant 0 : i32
    return %c0_i32, %c0_i32_0 : i32, i32
  }
  func.func @transform_5(%arg0: i32) -> (i32, i32) {
    %c0_i32 = arith.constant 0 : i32
    %c0_i32_0 = arith.constant 0 : i32
    %c0_i32_1 = arith.constant 0 : i32
    return %c0_i32, %c0_i32_0 : i32, i32
  }
  func.func @transform_6(%arg0: i32) -> (i32, i32) {
    %c0_i32 = arith.constant 0 : i32
    %c0_i32_0 = arith.constant 0 : i32
    %c0_i32_1 = arith.constant 0 : i32
    return %c0_i32, %c0_i32_0 : i32, i32
  }
  func.func @transform_7(%arg0: i32) -> (i32, i32) {
    %c0_i32 = arith.constant 0 : i32
    %c0_i32_0 = arith.constant 0 : i32
    return %arg0, %c0_i32 : i32, i32
  }
  func.func @transform_8(%arg0: i32) -> (i32, i32) {
    %c0_i32 = arith.constant 0 : i32
    %c0_i32_0 = arith.constant 0 : i32
    return %arg0, %c0_i32 : i32, i32
  }
}

</mosaic_0001>

<bundles_post_ra>
// kernel: mlp_forward.1
= control target key start
LH: loop header
LB: loop body
LE: loop exit
PB: predicated region body
PF: predicated region fallthrough
CT: control target
= control target key end

     0   :  { %14 = vsyncpa [#allocation3], 0  ;;  %s1786_s27 = smov [#allocation2]   ;;  %s1950_s0 = inlined_call_operand.vmem [shape: bf16[8,1024], index: 0, kind: input, shape index: {}]   ;;  %s1951_s1 = inlined_call_operand.hbm [shape: bf16[1024,256], index: 1, kind: input, shape index: {}]   ;;  %s1952_s2 = inlined_call_operand.vmem [shape: f32[1,256], index: 2, kind: input, shape index: {}]   ;;  %s1953_s3 = inlined_call_operand.vmem [shape: bf16[256,128], index: 3, kind: input, shape index: {}]   ;;  %s1954_s4 = inlined_call_operand.vmem [shape: f32[1,128], index: 4, kind: input, shape index: {}]   ;;  %s1955_s5 = inlined_call_operand.vmem [shape: bf16[128,128], index: 5, kind: input, shape index: {}]   ;;  %s1956_s6 = inlined_call_operand.vmem [shape: f32[1,128], index: 6, kind: input, shape index: {}]   ;;  %s1957_s7 = inlined_call_operand.vmem [shape: f32[8,128], index: 7, kind: output, shape index: {0}]   ;;  %s1958_s8 = inlined_call_operand.vmem [shape: f32[8,128], index: 8, kind: output, shape index: {1}]  }
   0x1   :  { %s22_s28 = sshll.u32 %s1786_s27, 4  ;;  %s23_s28 = int_to_ptr.vmem [resolvable:$true] %s22_s28 }
   0x2   :  { %s1772_s29 = scalar_lea.vmem %s23_s28, 16384  ;;  %p1777_p1 = scmp.lt.s32.totalorder %s23_s28, %s23_s28 }
   0x3   :  { %p1773_p0 = scmp.ne.s32.totalorder %s23_s28, %s1772_s29  ;;  %p1778_p2 = scmp.lt.s32.totalorder %s1772_s29, %s1772_s29 }
   0x5   :  { %p1779_p3 = por %p1778_p2, %p1777_p1 }
   0x7   :  { %p1780_p4 = pnand %p1779_p3, %p1773_p0 }
   0x9   :  { %1783 = shalt.err (!%p1780_p4)
}
   0xa   :  { %s1787_s30 = smov 128   ;;  %s1788_s9 = smov 8  }
   0xb   :  { %28 = dma.hbm_to_vmem [thread:$0]  %s1951_s1, 16384, %s23_s28, [#allocation3], %s1787_s30, %s1787_s30, %s1788_s9  }
   0xc   :  { %1784 = dma.done.wait [#allocation3], 16384  }
   0xd   :  { %1785 = vsyncadd [#allocation3], 4294950912  ;;  %v1540_v0 = vld [vmem:[#allocation2 + $0x74] ss:$8 sps:$4 sm:$0xff]   ;;  %v1544_v2 = vld [vmem:[#allocation2 + $0x70] ss:$8 sps:$4 sm:$0xff]  }
   0xe   :  { %v1542_v1 = vld [vmem:[#allocation2 + $0x174] ss:$8 sps:$4 sm:$0xff]   ;;  %855 = vmatprep.subr.bf16.mxu0 %v1540_v0  ;;  %v1545_v3 = vld [vmem:[#allocation2 + $0x170] ss:$8 sps:$4 sm:$0xff]   ;;  %v1546_v4 = vld [vmem:[#allocation2 + $0x64] ss:$8 sps:$4 sm:$0xff]  }
   0xf   :  { %896 = vmatprep.subr.bf16.mxu1 %v1542_v1  ;;  %856 = vmatpush1.bf16.msra.mxu0 %v1544_v2  ;;  %v1548_v5 = vld [vmem:[#allocation2 + $0x164] ss:$8 sps:$4 sm:$0xff]   ;;  %v1550_v6 = vld [vmem:[#allocation2 + $0x60] ss:$8 sps:$4 sm:$0xff]   ;;  %v1552_v8 = vld [vmem:[#allocation2 + $0x54] ss:$8 sps:$4 sm:$0xff]  }
  0x10   :  { %897 = vmatpush1.bf16.msra.mxu1 %v1545_v3  ;;  %857 = vmatprep.subr.bf16.mxu0 %v1546_v4  ;;  %v1551_v7 = vld [vmem:[#allocation2 + $0x160] ss:$8 sps:$4 sm:$0xff]   ;;  %v1554_v9 = vld [vmem:[#allocation2 + $0x154] ss:$8 sps:$4 sm:$0xff]   ;;  %v1556_v10 = vld [vmem:[#allocation2 + $0x50] ss:$8 sps:$4 sm:$0xff]  }
  0x11   :  { %898 = vmatprep.subr.bf16.mxu1 %v1548_v5  ;;  %v1557_v11 = vld [vmem:[#allocation2 + $0x150] ss:$8 sps:$4 sm:$0xff]   ;;  %v1558_v12 = vld [vmem:[#allocation2 + $0x44] ss:$8 sps:$4 sm:$0xff]   ;;  %v1562_v14 = vld [vmem:[#allocation2 + $0x40] ss:$8 sps:$4 sm:$0xff]  }
  0x12   :  { %v1560_v13 = vld [vmem:[#allocation2 + $0x144] ss:$8 sps:$4 sm:$0xff]   ;;  %v1563_v15 = vld [vmem:[#allocation2 + $0x140] ss:$8 sps:$4 sm:$0xff]   ;;  %v1564_v16 = vld [vmem:[#allocation2 + $0x34] ss:$8 sps:$4 sm:$0xff]  }
  0x13   :  { %858 = vmatpush1.bf16.msra.mxu0 %v1550_v6  ;;  %v1566_v17 = vld [vmem:[#allocation2 + $0x134] ss:$8 sps:$4 sm:$0xff]   ;;  %v1568_v18 = vld [vmem:[#allocation2 + $0x30] ss:$8 sps:$4 sm:$0xff]   ;;  %v1570_v20 = vld [vmem:[#allocation2 + $0x24] ss:$8 sps:$4 sm:$0xff]  }
  0x14   :  { %899 = vmatpush1.bf16.msra.mxu1 %v1551_v7  ;;  %859 = vmatprep.subr.bf16.mxu0 %v1552_v8  ;;  %v1569_v19 = vld [vmem:[#allocation2 + $0x130] ss:$8 sps:$4 sm:$0xff]   ;;  %v1572_v21 = vld [vmem:[#allocation2 + $0x124] ss:$8 sps:$4 sm:$0xff]   ;;  %v1574_v22 = vld [vmem:[#allocation2 + $0x20] ss:$8 sps:$4 sm:$0xff]  }
  0x15   :  { %900 = vmatprep.subr.bf16.mxu1 %v1554_v9  ;;  %v1575_v23 = vld [vmem:[#allocation2 + $0x120] ss:$8 sps:$4 sm:$0xff]   ;;  %v1576_v24 = vld [vmem:[#allocation2 + $0x14] ss:$8 sps:$4 sm:$0xff]   ;;  %v1580_v26 = vld [vmem:[#allocation2 + $0x10] ss:$8 sps:$4 sm:$0xff]  }
  0x16   :  { %v1578_v25 = vld [vmem:[#allocation2 + $0x114] ss:$8 sps:$4 sm:$0xff]   ;;  %v1581_v27 = vld [vmem:[#allocation2 + $0x110] ss:$8 sps:$4 sm:$0xff]   ;;  %v1582_v28 = vld [vmem:[#allocation2 + $0x4] ss:$8 sps:$4 sm:$0xff]  }
  0x17   :  { %860 = vmatpush1.bf16.msra.mxu0 %v1556_v10  ;;  %v1584_v29 = vld [vmem:[#allocation2 + $0x104] ss:$8 sps:$4 sm:$0xff]   ;;  %v1586_v30 = vld [vmem:[#allocation2] ss:$8 sps:$4 sm:$0xff]   ;;  %v1588_v32 = vld [vmem:[#allocation2 + $0xf4] ss:$8 sps:$4 sm:$0xff]  }
  0x18   :  { %901 = vmatpush1.bf16.msra.mxu1 %v1557_v11  ;;  %861 = vmatprep.subr.bf16.mxu0 %v1558_v12  ;;  %v1587_v31 = vld [vmem:[#allocation2 + $0x100] ss:$8 sps:$4 sm:$0xff]   ;;  %v1590_v33 = vld [vmem:[#allocation2 + $0x1f4] ss:$8 sps:$4 sm:$0xff]   ;;  %v1592_v34 = vld [vmem:[#allocation2 + $0xf0] ss:$8 sps:$4 sm:$0xff]  }
  0x19   :  { %902 = vmatprep.subr.bf16.mxu1 %v1560_v13  ;;  %v1593_v35 = vld [vmem:[#allocation2 + $0x1f0] ss:$8 sps:$4 sm:$0xff]   ;;  %v1594_v36 = vld [vmem:[#allocation2 + $0xe4] ss:$8 sps:$4 sm:$0xff]   ;;  %v1598_v38 = vld [vmem:[#allocation2 + $0xe0] ss:$8 sps:$4 sm:$0xff]  }
  0x1a   :  { %v1596_v37 = vld [vmem:[#allocation2 + $0x1e4] ss:$8 sps:$4 sm:$0xff]   ;;  %v1599_v39 = vld [vmem:[#allocation2 + $0x1e0] ss:$8 sps:$4 sm:$0xff]   ;;  %v1600_v40 = vld [vmem:[#allocation2 + $0xd4] ss:$8 sps:$4 sm:$0xff]  }
  0x1b   :  { %862 = vmatpush1.bf16.msra.mxu0 %v1562_v14  ;;  %v1602_v41 = vld [vmem:[#allocation2 + $0x1d4] ss:$8 sps:$4 sm:$0xff]   ;;  %v1604_v42 = vld [vmem:[#allocation2 + $0xd0] ss:$8 sps:$4 sm:$0xff]   ;;  %v1606_v44 = vld [vmem:[#allocation2 + $0xc4] ss:$8 sps:$4 sm:$0xff]  }
  0x1c   :  { %903 = vmatpush1.bf16.msra.mxu1 %v1563_v15  ;;  %863 = vmatprep.subr.bf16.mxu0 %v1564_v16  ;;  %v1605_v43 = vld [vmem:[#allocation2 + $0x1d0] ss:$8 sps:$4 sm:$0xff]   ;;  %v1608_v45 = vld [vmem:[#allocation2 + $0x1c4] ss:$8 sps:$4 sm:$0xff]   ;;  %v1610_v49 = vld [vmem:[#allocation2 + $0xc0] ss:$8 sps:$4 sm:$0xff]  }
  0x1d   :  { %904 = vmatprep.subr.bf16.mxu1 %v1566_v17  ;;  %v43_v46 = vld [vmem:[%s1950_s0] sm:$0xff]  ;;  %v44_v48 = vld [vmem:[%s1950_s0 + $0x8] sm:$0xff]  ;;  %v1612_v52 = vld [vmem:[#allocation2 + $0xb4] ss:$8 sps:$4 sm:$0xff]   ;;  %vm1790_vm0 = vmmov 0  }
  0x1e   :  { %v1323_v47 = vcombine.high %v43_v46, %v43_v46  ;;  %v1611_v50 = vld [vmem:[#allocation2 + $0x1c0] ss:$8 sps:$4 sm:$0xff]   ;;  %v1325_v51 = vcombine.high %v44_v48, %v44_v48  ;;  %v1614_v53 = vld [vmem:[#allocation2 + $0x1b4] ss:$8 sps:$4 sm:$0xff]   ;;  %v1616_v54 = vld [vmem:[#allocation2 + $0xb0] ss:$8 sps:$4 sm:$0xff]   ;;  %v1322_v6 = vcombine.low %v43_v46, %v43_v46  ;;  %v1324_v7 = vcombine.low %v44_v48, %v44_v48 }
  0x1f   :  { %864 = vmatpush1.bf16.msra.mxu0 %v1568_v18  ;;  %v1617_v55 = vld [vmem:[#allocation2 + $0x1b0] ss:$8 sps:$4 sm:$0xff]   ;;  %v1618_v56 = vld [vmem:[#allocation2 + $0xa4] ss:$8 sps:$4 sm:$0xff]   ;;  %v1622_v58 = vld [vmem:[#allocation2 + $0xa0] ss:$8 sps:$4 sm:$0xff]  }
  0x20   :  { %905 = vmatpush1.bf16.msra.mxu1 %v1569_v19  ;;  %865 = vmatprep.subr.bf16.mxu0 %v1570_v20  ;;  %v1620_v57 = vld [vmem:[#allocation2 + $0x1a4] ss:$8 sps:$4 sm:$0xff]   ;;  %v1623_v59 = vld [vmem:[#allocation2 + $0x1a0] ss:$8 sps:$4 sm:$0xff]   ;;  %v1624_v60 = vld [vmem:[#allocation2 + $0x94] ss:$8 sps:$4 sm:$0xff]  }
  0x21   :  { %906 = vmatprep.subr.bf16.mxu1 %v1572_v21  ;;  %887 = vmatprep.mubr.bf16.mxu0 %v1323_v47  ;;  %v1626_v61 = vld [vmem:[#allocation2 + $0x194] ss:$8 sps:$4 sm:$0xff]   ;;  %v1628_v62 = vld [vmem:[#allocation2 + $0x90] ss:$8 sps:$4 sm:$0xff]   ;;  %v1630_v0 = vld [vmem:[#allocation2 + $0x84] ss:$8 sps:$4 sm:$0xff]  }
  0x22   :  { %928 = vmatprep.mubr.bf16.mxu1 %v1325_v51  ;;  %v1629_v63 = vld [vmem:[#allocation2 + $0x190] ss:$8 sps:$4 sm:$0xff]   ;;  %v1632_v1 = vld [vmem:[#allocation2 + $0x184] ss:$8 sps:$4 sm:$0xff]   ;;  %v1634_v2 = vld [vmem:[#allocation2 + $0x80] ss:$8 sps:$4 sm:$0xff]  }
  0x23   :  { %866 = vmatpush1.bf16.msra.mxu0 %v1574_v22  ;;  %v1635_v3 = vld [vmem:[#allocation2 + $0x180] ss:$8 sps:$4 sm:$0xff]   ;;  %v1642_v4 = vld [vmem:[#allocation2 + $0x274] ss:$8 sps:$4 sm:$0xff]   ;;  %v1640_v8 = vld [vmem:[#allocation2 + $0x270] ss:$8 sps:$4 sm:$0xff]  }
  0x24   :  { %907 = vmatpush1.bf16.msra.mxu1 %v1575_v23  ;;  %867 = vmatprep.subr.bf16.mxu0 %v1576_v24  ;;  %v1645_v5 = vld [vmem:[#allocation2 + $0x374] ss:$8 sps:$4 sm:$0xff]   ;;  %v1643_v9 = vld [vmem:[#allocation2 + $0x370] ss:$8 sps:$4 sm:$0xff]   ;;  %v1648_v10 = vld [vmem:[#allocation2 + $0x264] ss:$8 sps:$4 sm:$0xff]  }
  0x25   :  { %908 = vmatprep.subr.bf16.mxu1 %v1578_v25  ;;  %v1651_v11 = vld [vmem:[#allocation2 + $0x364] ss:$8 sps:$4 sm:$0xff]   ;;  %v1646_v12 = vld [vmem:[#allocation2 + $0x260] ss:$8 sps:$4 sm:$0xff]   ;;  %v1654_v14 = vld [vmem:[#allocation2 + $0x254] ss:$8 sps:$4 sm:$0xff]  }
  0x26   :  { %v1649_v13 = vld [vmem:[#allocation2 + $0x360] ss:$8 sps:$4 sm:$0xff]   ;;  %v1657_v15 = vld [vmem:[#allocation2 + $0x354] ss:$8 sps:$4 sm:$0xff]   ;;  %v1652_v16 = vld [vmem:[#allocation2 + $0x250] ss:$8 sps:$4 sm:$0xff]  }
  0x27   :  { %868 = vmatpush1.bf16.msra.mxu0 %v1580_v26  ;;  %v1655_v17 = vld [vmem:[#allocation2 + $0x350] ss:$8 sps:$4 sm:$0xff]   ;;  %v1660_v18 = vld [vmem:[#allocation2 + $0x244] ss:$8 sps:$4 sm:$0xff]   ;;  %v1658_v20 = vld [vmem:[#allocation2 + $0x240] ss:$8 sps:$4 sm:$0xff]  }
  0x28   :  { %909 = vmatpush1.bf16.msra.mxu1 %v1581_v27  ;;  %869 = vmatprep.subr.bf16.mxu0 %v1582_v28  ;;  %v1663_v19 = vld [vmem:[#allocation2 + $0x344] ss:$8 sps:$4 sm:$0xff]   ;;  %v1661_v21 = vld [vmem:[#allocation2 + $0x340] ss:$8 sps:$4 sm:$0xff]   ;;  %v1666_v22 = vld [vmem:[#allocation2 + $0x234] ss:$8 sps:$4 sm:$0xff]  }
  0x29   :  { %910 = vmatprep.subr.bf16.mxu1 %v1584_v29  ;;  %v1669_v23 = vld [vmem:[#allocation2 + $0x334] ss:$8 sps:$4 sm:$0xff]   ;;  %v1664_v24 = vld [vmem:[#allocation2 + $0x230] ss:$8 sps:$4 sm:$0xff]   ;;  %v1672_v26 = vld [vmem:[#allocation2 + $0x224] ss:$8 sps:$4 sm:$0xff]  }
  0x2a   :  { %v1667_v25 = vld [vmem:[#allocation2 + $0x330] ss:$8 sps:$4 sm:$0xff]   ;;  %v1675_v27 = vld [vmem:[#allocation2 + $0x324] ss:$8 sps:$4 sm:$0xff]   ;;  %v1670_v28 = vld [vmem:[#allocation2 + $0x220] ss:$8 sps:$4 sm:$0xff]  }
  0x2b   :  { %870 = vmatpush1.bf16.msra.mxu0 %v1586_v30  ;;  %v1673_v29 = vld [vmem:[#allocation2 + $0x320] ss:$8 sps:$4 sm:$0xff]   ;;  %v1678_v30 = vld [vmem:[#allocation2 + $0x214] ss:$8 sps:$4 sm:$0xff]   ;;  %v1696_v46 = vld [vmem:[#allocation2 + $0x2e4] ss:$8 sps:$4 sm:$0xff]  }
  0x2c   :  { %911 = vmatpush1.bf16.msra.mxu1 %v1587_v31  ;;  %871 = vmatprep.subr.bf16.mxu0 %v1588_v32  ;;  %v1681_v31 = vld [vmem:[#allocation2 + $0x314] ss:$8 sps:$4 sm:$0xff]   ;;  %v1676_v32 = vld [vmem:[#allocation2 + $0x210] ss:$8 sps:$4 sm:$0xff]   ;;  %v1699_v47 = vld [vmem:[#allocation2 + $0x3e4] ss:$8 sps:$4 sm:$0xff]  }
  0x2d   :  { %912 = vmatprep.subr.bf16.mxu1 %v1590_v33  ;;  %v1679_v33 = vld [vmem:[#allocation2 + $0x310] ss:$8 sps:$4 sm:$0xff]   ;;  %v1694_v48 = vld [vmem:[#allocation2 + $0x2e0] ss:$8 sps:$4 sm:$0xff]   ;;  %v1705_v51 = vld [vmem:[#allocation2 + $0x3d4] ss:$8 sps:$4 sm:$0xff]  }
  0x2f   :  { %872 = vmatpush2.bf16.msra.mxu0 %v1592_v34  ;;  %v1848_v34 = vld [vmem:[%s1950_s0 + $0x10] sm:$0xff] }
  0x30   :  { %913 = vmatpush2.bf16.msra.mxu1 %v1593_v35  ;;  %873 = vmatprep.subr.bf16.mxu0 %v1594_v36  ;;  %v1853_v35 = vld [vmem:[%s1950_s0 + $0x18] sm:$0xff]  ;;  %v1684_v36 = vld [vmem:[#allocation2 + $0x204] ss:$8 sps:$4 sm:$0xff]  }
  0x31   :  { %914 = vmatprep.subr.bf16.mxu1 %v1596_v37  ;;  %v1687_v37 = vld [vmem:[#allocation2 + $0x304] ss:$8 sps:$4 sm:$0xff]  }
  0x33   :  { %874 = vmatpush2.bf16.msra.mxu0 %v1598_v38  ;;  %v1327_v38 = vcombine.high %v1848_v34, %v1848_v34 }
  0x34   :  { %915 = vmatpush2.bf16.msra.mxu1 %v1599_v39  ;;  %875 = vmatprep.subr.bf16.mxu0 %v1600_v40  ;;  %v1329_v39 = vcombine.high %v1853_v35, %v1853_v35  ;;  %v1682_v40 = vld [vmem:[#allocation2 + $0x200] ss:$8 sps:$4 sm:$0xff]  }
  0x35   :  { %916 = vmatprep.subr.bf16.mxu1 %v1602_v41  ;;  %v1685_v41 = vld [vmem:[#allocation2 + $0x300] ss:$8 sps:$4 sm:$0xff]  }
  0x37   :  { %876 = vmatpush2.bf16.msra.mxu0 %v1604_v42  ;;  %v1690_v42 = vld [vmem:[#allocation2 + $0x2f4] ss:$8 sps:$4 sm:$0xff]  }
  0x38   :  { %917 = vmatpush2.bf16.msra.mxu1 %v1605_v43  ;;  %877 = vmatprep.subr.bf16.mxu0 %v1606_v44  ;;  %v1693_v43 = vld [vmem:[#allocation2 + $0x3f4] ss:$8 sps:$4 sm:$0xff]   ;;  %v1688_v44 = vld [vmem:[#allocation2 + $0x2f0] ss:$8 sps:$4 sm:$0xff]  }
  0x39   :  { %918 = vmatprep.subr.bf16.mxu1 %v1608_v45  ;;  %v1691_v45 = vld [vmem:[#allocation2 + $0x3f0] ss:$8 sps:$4 sm:$0xff]  }
  0x3b   :  { %878 = vmatpush2.bf16.msra.mxu0 %v1610_v49  ;;  %v1697_v49 = vld [vmem:[#allocation2 + $0x3e0] ss:$8 sps:$4 sm:$0xff]  }
  0x3c   :  { %919 = vmatpush2.bf16.msra.mxu1 %v1611_v50  ;;  %879 = vmatprep.subr.bf16.mxu0 %v1612_v52  ;;  %v1702_v50 = vld [vmem:[#allocation2 + $0x2d4] ss:$8 sps:$4 sm:$0xff]   ;;  %v1700_v52 = vld [vmem:[#allocation2 + $0x2d0] ss:$8 sps:$4 sm:$0xff]  }
  0x3d   :  { %920 = vmatprep.subr.bf16.mxu1 %v1614_v53  ;;  %v1703_v53 = vld [vmem:[#allocation2 + $0x3d0] ss:$8 sps:$4 sm:$0xff]  }
  0x3f   :  { %880 = vmatpush2.bf16.msra.mxu0 %v1616_v54  ;;  %v1708_v54 = vld [vmem:[#allocation2 + $0x2c4] ss:$8 sps:$4 sm:$0xff]  }
  0x40   :  { %921 = vmatpush2.bf16.msra.mxu1 %v1617_v55  ;;  %881 = vmatprep.subr.bf16.mxu0 %v1618_v56  ;;  %v1711_v55 = vld [vmem:[#allocation2 + $0x3c4] ss:$8 sps:$4 sm:$0xff]   ;;  %v1706_v56 = vld [vmem:[#allocation2 + $0x2c0] ss:$8 sps:$4 sm:$0xff]  }
  0x41   :  { %922 = vmatprep.subr.bf16.mxu1 %v1620_v57  ;;  %v1709_v57 = vld [vmem:[#allocation2 + $0x3c0] ss:$8 sps:$4 sm:$0xff]  }
  0x43   :  { %882 = vmatpush2.bf16.msra.mxu0 %v1622_v58  ;;  %v1714_v58 = vld [vmem:[#allocation2 + $0x2b4] ss:$8 sps:$4 sm:$0xff]  }
  0x44   :  { %923 = vmatpush2.bf16.msra.mxu1 %v1623_v59  ;;  %883 = vmatprep.subr.bf16.mxu0 %v1624_v60  ;;  %v1717_v59 = vld [vmem:[#allocation2 + $0x3b4] ss:$8 sps:$4 sm:$0xff]   ;;  %v1712_v60 = vld [vmem:[#allocation2 + $0x2b0] ss:$8 sps:$4 sm:$0xff]  }
  0x45   :  { %924 = vmatprep.subr.bf16.mxu1 %v1626_v61  ;;  %v1715_v61 = vld [vmem:[#allocation2 + $0x3b0] ss:$8 sps:$4 sm:$0xff]  }
  0x47   :  { %884 = vmatpush2.bf16.msra.mxu0 %v1628_v62  ;;  %v1720_v62 = vld [vmem:[#allocation2 + $0x2a4] ss:$8 sps:$4 sm:$0xff]  }
  0x48   :  { %925 = vmatpush2.bf16.msra.mxu1 %v1629_v63  ;;  %885 = vmatprep.subr.bf16.mxu0 %v1630_v0  ;;  %v1723_v63 = vld [vmem:[#allocation2 + $0x3a4] ss:$8 sps:$4 sm:$0xff]   ;;  %v1718_v0 = vld [vmem:[#allocation2 + $0x2a0] ss:$8 sps:$4 sm:$0xff]  }
  0x49   :  { %926 = vmatprep.subr.bf16.mxu1 %v1632_v1  ;;  %v1721_v1 = vld [vmem:[#allocation2 + $0x3a0] ss:$8 sps:$4 sm:$0xff]  }
  0x4b   :  { %886 = vmatpush2.bf16.msra.mxu0 %v1634_v2  ;;  %v1726_v2 = vld [vmem:[#allocation2 + $0x294] ss:$8 sps:$4 sm:$0xff]  }
  0x4c   :  { %927 = vmatpush2.bf16.msra.mxu1 %v1635_v3  ;;  %937 = vmatprep.subr.bf16.mxu0 %v1642_v4  ;;  %v1729_v3 = vld [vmem:[#allocation2 + $0x394] ss:$8 sps:$4 sm:$0xff]   ;;  %v1724_v4 = vld [vmem:[#allocation2 + $0x290] ss:$8 sps:$4 sm:$0xff]  }
  0x4d   :  { %978 = vmatprep.subr.bf16.mxu1 %v1645_v5  ;;  %v1727_v5 = vld [vmem:[#allocation2 + $0x390] ss:$8 sps:$4 sm:$0xff]  }
  0x4e   :  { %888 = vmatmul.mubr.bf16.vlgmr.msra.gmra.mxu0 %v1322_v6  ;;  %v1732_v6 = vld [vmem:[#allocation2 + $0x284] ss:$8 sps:$4 sm:$0xff]  }
  0x4f   :  { %929 = vmatmul.mubr.bf16.vlgmr.msra.gmra.mxu1 %v1324_v7  ;;  %938 = vmatpush1.bf16.msra.mxu0 %v1640_v8  ;;  %v1735_v7 = vld [vmem:[#allocation2 + $0x384] ss:$8 sps:$4 sm:$0xff]   ;;  %v1730_v8 = vld [vmem:[#allocation2 + $0x280] ss:$8 sps:$4 sm:$0xff]  }
  0x50   :  { %979 = vmatpush1.bf16.msra.mxu1 %v1643_v9  ;;  %939 = vmatprep.subr.bf16.mxu0 %v1648_v10  ;;  %v1733_v9 = vld [vmem:[#allocation2 + $0x380] ss:$8 sps:$4 sm:$0xff]   ;;  %v1326_v10 = vcombine.low %v1848_v34, %v1848_v34 }
  0x51   :  { %980 = vmatprep.subr.bf16.mxu1 %v1651_v11  ;;  %969 = vmatprep.mubr.bf16.mxu0 %v1327_v38  ;;  %v1328_v11 = vcombine.low %v1853_v35, %v1853_v35 }
  0x52   :  { %1010 = vmatprep.mubr.bf16.mxu1 %v1329_v39 }
  0x53   :  { %940 = vmatpush1.bf16.msra.mxu0 %v1646_v12  ;;  %v1740_v12 = vld [vmem:[%s1953_s3 + $0x78] sm:$0xff]  }
  0x54   :  { %981 = vmatpush1.bf16.msra.mxu1 %v1649_v13  ;;  %941 = vmatprep.subr.bf16.mxu0 %v1654_v14  ;;  %v1741_v13 = vld [vmem:[%s1953_s3 + $0x38] sm:$0xff]   ;;  %v1742_v14 = vld [vmem:[%s1953_s3 + $0x70] sm:$0xff]  }
  0x55   :  { %982 = vmatprep.subr.bf16.mxu1 %v1657_v15  ;;  %v1743_v15 = vld [vmem:[%s1953_s3 + $0x30] sm:$0xff]  }
  0x57   :  { %942 = vmatpush1.bf16.msra.mxu0 %v1652_v16  ;;  %v1744_v16 = vld [vmem:[%s1953_s3 + $0x68] sm:$0xff]  }
  0x58   :  { %983 = vmatpush1.bf16.msra.mxu1 %v1655_v17  ;;  %943 = vmatprep.subr.bf16.mxu0 %v1660_v18  ;;  %v1745_v17 = vld [vmem:[%s1953_s3 + $0x28] sm:$0xff]   ;;  %v1746_v18 = vld [vmem:[%s1953_s3 + $0x60] sm:$0xff]  }
  0x59   :  { %984 = vmatprep.subr.bf16.mxu1 %v1663_v19  ;;  %v1747_v19 = vld [vmem:[%s1953_s3 + $0x20] sm:$0xff]  }
  0x5b   :  { %944 = vmatpush1.bf16.msra.mxu0 %v1658_v20  ;;  %v1748_v20 = vld [vmem:[%s1953_s3 + $0x58] sm:$0xff]  }
  0x5c   :  { %985 = vmatpush1.bf16.msra.mxu1 %v1661_v21  ;;  %945 = vmatprep.subr.bf16.mxu0 %v1666_v22  ;;  %v1749_v21 = vld [vmem:[%s1953_s3 + $0x18] sm:$0xff]   ;;  %v1750_v22 = vld [vmem:[%s1953_s3 + $0x50] sm:$0xff]  }
  0x5d   :  { %986 = vmatprep.subr.bf16.mxu1 %v1669_v23  ;;  %v1751_v23 = vld [vmem:[%s1953_s3 + $0x10] sm:$0xff]  }
  0x5f   :  { %946 = vmatpush1.bf16.msra.mxu0 %v1664_v24  ;;  %v1752_v24 = vld [vmem:[%s1953_s3 + $0x48] sm:$0xff]  }
  0x60   :  { %987 = vmatpush1.bf16.msra.mxu1 %v1667_v25  ;;  %947 = vmatprep.subr.bf16.mxu0 %v1672_v26  ;;  %v1753_v25 = vld [vmem:[%s1953_s3 + $0x8] sm:$0xff]   ;;  %v1754_v26 = vld [vmem:[%s1953_s3 + $0x40] sm:$0xff]  }
  0x61   :  { %988 = vmatprep.subr.bf16.mxu1 %v1675_v27  ;;  %v1755_v27 = vld [vmem:[%s1953_s3] sm:$0xff]  }
  0x63   :  { %948 = vmatpush1.bf16.msra.mxu0 %v1670_v28  ;;  %v1756_v28 = vld [vmem:[%s1955_s5 + $0x38] sm:$0xff]  }
  0x64   :  { %989 = vmatpush1.bf16.msra.mxu1 %v1673_v29  ;;  %949 = vmatprep.subr.bf16.mxu0 %v1678_v30  ;;  %v1789_v29 = vmov 0.0   ;;  %v1757_v30 = vld [vmem:[%s1955_s5 + $0x30] sm:$0xff]  }
  0x65   :  { %990 = vmatprep.subr.bf16.mxu1 %v1681_v31  ;;  %v1758_v31 = vld [vmem:[%s1955_s5 + $0x28] sm:$0xff]  }
  0x67   :  { %950 = vmatpush1.bf16.msra.mxu0 %v1676_v32  ;;  %v1759_v32 = vld [vmem:[%s1955_s5 + $0x20] sm:$0xff]  }
  0x68   :  { %991 = vmatpush1.bf16.msra.mxu1 %v1679_v33  ;;  %951 = vmatprep.subr.bf16.mxu0 %v1684_v36  ;;  %v1760_v33 = vld [vmem:[%s1955_s5 + $0x18] sm:$0xff]  }
  0x69   :  { %992 = vmatprep.subr.bf16.mxu1 %v1687_v37 }
  0x6b   :  { %952 = vmatpush1.bf16.msra.mxu0 %v1682_v40 }
  0x6c   :  { %993 = vmatpush1.bf16.msra.mxu1 %v1685_v41  ;;  %953 = vmatprep.subr.bf16.mxu0 %v1690_v42  ;;  %v177_v42 = vlaneseq }
  0x6d   :  { %994 = vmatprep.subr.bf16.mxu1 %v1693_v43 }
  0x6e   :  { %v178_v43 = vshrl.u32 %v177_v42, 7 }
  0x6f   :  { %954 = vmatpush2.bf16.msra.mxu0 %v1688_v44 }
  0x70   :  { %995 = vmatpush2.bf16.msra.mxu1 %v1691_v45  ;;  %955 = vmatprep.subr.bf16.mxu0 %v1696_v46  ;;  %v179_v44 = vsub.s32 0, %v178_v43  ;;  %v175_v45 = vld [vmem:[%s1952_s2] sm:$0x3]  ;;  %v183_v46 = vsub.s32 1, %v178_v43 }
  0x71   :  { %996 = vmatprep.subr.bf16.mxu1 %v1699_v47 }
  0x72   :  { %v180_v47 = vrot.slane %v175_v45, %v179_v44 }
  0x73   :  { %956 = vmatpush2.bf16.msra.mxu0 %v1694_v48  ;;  %v184_v48 = vrot.slane %v175_v45, %v183_v46 }
  0x74   :  { %997 = vmatpush2.bf16.msra.mxu1 %v1697_v49  ;;  %957 = vmatprep.subr.bf16.mxu0 %v1702_v50 }
  0x75   :  { %998 = vmatprep.subr.bf16.mxu1 %v1705_v51 }
  0x77   :  { %958 = vmatpush2.bf16.msra.mxu0 %v1700_v52 }
  0x78   :  { %999 = vmatpush2.bf16.msra.mxu1 %v1703_v53  ;;  %959 = vmatprep.subr.bf16.mxu0 %v1708_v54 }
  0x79   :  { %1000 = vmatprep.subr.bf16.mxu1 %v1711_v55 }
  0x7b   :  { %960 = vmatpush2.bf16.msra.mxu0 %v1706_v56 }
  0x7c   :  { %1001 = vmatpush2.bf16.msra.mxu1 %v1709_v57  ;;  %961 = vmatprep.subr.bf16.mxu0 %v1714_v58 }
  0x7d   :  { %1002 = vmatprep.subr.bf16.mxu1 %v1717_v59 }
  0x7f   :  { %962 = vmatpush2.bf16.msra.mxu0 %v1712_v60 }
  0x80   :  { %1003 = vmatpush2.bf16.msra.mxu1 %v1715_v61  ;;  %963 = vmatprep.subr.bf16.mxu0 %v1720_v62 }
  0x81   :  { %1004 = vmatprep.subr.bf16.mxu1 %v1723_v63 }
  0x83   :  { %964 = vmatpush2.bf16.msra.mxu0 %v1718_v0 }
  0x84   :  { %1005 = vmatpush2.bf16.msra.mxu1 %v1721_v1  ;;  %965 = vmatprep.subr.bf16.mxu0 %v1726_v2 }
  0x85   :  { %1006 = vmatprep.subr.bf16.mxu1 %v1729_v3 }
  0x87   :  { %966 = vmatpush2.bf16.msra.mxu0 %v1724_v4 }
  0x88   :  { %1007 = vmatpush2.bf16.msra.mxu1 %v1727_v5  ;;  %967 = vmatprep.subr.bf16.mxu0 %v1732_v6  ;;  %v1761_v5 = vld [vmem:[%s1955_s5 + $0x10] sm:$0xff]   ;;  %v1762_v6 = vld [vmem:[%s1955_s5 + $0x8] sm:$0xff]  }
  0x89   :  { %1008 = vmatprep.subr.bf16.mxu1 %v1735_v7  ;;  %v1763_v7 = vld [vmem:[%s1955_s5] sm:$0xff]  }
  0x8b   :  { %968 = vmatpush2.bf16.msra.mxu0 %v1730_v8 }
  0x8c   :  { %1009 = vmatpush2.bf16.msra.mxu1 %v1733_v9  ;;  %1484 = vmatprep.subr.bf16.mxu0 %v1740_v12  ;;  %v1458_v9 = vld [vmem:[%s1954_s4] ss:$0 sm:$0xff] }
  0x8d   :  { %1515 = vmatprep.subr.bf16.mxu1 %v1789_v29 }
  0x8e   :  { %970 = vmatmul.mubr.bf16.vlgmr.msra.gmra.mxu0 %v1326_v10 }
  0x8f   :  { %1011 = vmatmul.mubr.bf16.vlgmr.msra.gmra.mxu1 %v1328_v11  ;;  %1485 = vmatpush3.bf16.msra.mxu0 %v1741_v13 }
  0x90   :  { %1486 = vmatprep.subr.bf16.mxu0 %v1742_v14  ;;  %1516 = vmatpush3.bf16.msra.mxu1 %v1756_v28 }
  0x91   :  { %1517 = vmatprep.subr.bf16.mxu1 %v1789_v29  ;;  %1531 = vmatprep.mubr.msk.bf16.mxu1 %vm1790_vm0, %v1789_v29 }
  0x93   :  { %1487 = vmatpush3.bf16.msra.mxu0 %v1743_v15 }
  0x94   :  { %1488 = vmatprep.subr.bf16.mxu0 %v1744_v16  ;;  %1518 = vmatpush3.bf16.msra.mxu1 %v1757_v30 }
  0x95   :  { %1519 = vmatprep.subr.bf16.mxu1 %v1789_v29 }
  0x97   :  { %1489 = vmatpush3.bf16.msra.mxu0 %v1745_v17  ;;  %v1475_v17 = vld [vmem:[%s1956_s6] ss:$0 sm:$0xff] }
  0x98   :  { %1490 = vmatprep.subr.bf16.mxu0 %v1746_v18  ;;  %1520 = vmatpush3.bf16.msra.mxu1 %v1758_v31 }
  0x99   :  { %1521 = vmatprep.subr.bf16.mxu1 %v1789_v29 }
  0x9b   :  { %1491 = vmatpush3.bf16.msra.mxu0 %v1747_v19 }
  0x9c   :  { %1492 = vmatprep.subr.bf16.mxu0 %v1748_v20  ;;  %1522 = vmatpush3.bf16.msra.mxu1 %v1759_v32 }
  0x9d   :  { %1523 = vmatprep.subr.bf16.mxu1 %v1789_v29 }
  0x9f   :  { %1493 = vmatpush3.bf16.msra.mxu0 %v1749_v21 }
  0xa0   :  { %1494 = vmatprep.subr.bf16.mxu0 %v1750_v22  ;;  %1524 = vmatpush3.bf16.msra.mxu1 %v1760_v33 }
  0xa1   :  { %1525 = vmatprep.subr.bf16.mxu1 %v1789_v29 }
  0xa3   :  { %1495 = vmatpush3.bf16.msra.mxu0 %v1751_v23 }
  0xa4   :  { %1496 = vmatprep.subr.bf16.mxu0 %v1752_v24  ;;  %1526 = vmatpush3.bf16.msra.mxu1 %v1761_v5 }
  0xa5   :  { %1527 = vmatprep.subr.bf16.mxu1 %v1789_v29 }
  0xa7   :  { %1497 = vmatpush3.bf16.msra.mxu0 %v1753_v25 }
  0xa8   :  { %1498 = vmatprep.subr.bf16.mxu0 %v1754_v26  ;;  %1528 = vmatpush3.bf16.msra.mxu1 %v1762_v6 }
  0xa9   :  { %1529 = vmatprep.subr.bf16.mxu1 %v1789_v29 }
  0xab   :  { %1499 = vmatpush3.bf16.msra.mxu0 %v1755_v27 }
  0xac   :  { %1530 = vmatpush3.bf16.msra.mxu1 %v1763_v7 }
 0x10e   :  { %v889_v34 = vpop.f32.mrf.mxu0 }
 0x10f   :  { %v930_v35 = vpop.f32.mrf.mxu1  ;;  %v890_v49 = vadd.f32 %v889_v34, %v180_v47 }
 0x110   :  { %v891_v36 = vpop.f32.mrf.mxu0 }
 0x111   :  { %v932_v37 = vpop.f32.mrf.mxu1  ;;  %v892_v50 = vadd.f32 %v891_v36, %v184_v48  ;;  %v931_v51 = vadd.f32 %v930_v35, %v890_v49 }
 0x112   :  { %v893_v38 = vpop.f32.mrf.mxu0 }
 0x113   :  { %v934_v39 = vpop.f32.mrf.mxu1  ;;  %v933_v54 = vadd.f32 %v932_v37, %v892_v50 }
 0x114   :  { %v894_v40 = vpop.f32.mrf.mxu0 }
 0x115   :  { %v935_v41 = vpop.f32.mrf.mxu1 }
 0x14e   :  { %v971_v52 = vpop.f32.mrf.mxu0 }
 0x14f   :  { %v1012_v53 = vpop.f32.mrf.mxu1  ;;  %v972_v55 = vadd.f32 %v971_v52, %v931_v51 }
 0x150   :  { %v973_v56 = vpop.f32.mrf.mxu0 }
 0x151   :  { %v1014_v57 = vpop.f32.mrf.mxu1  ;;  %v1013_v58 = vadd.f32 %v1012_v53, %v972_v55  ;;  %v974_v59 = vadd.f32 %v973_v56, %v933_v54 }
 0x152   :  { %v975_v60 = vpop.f32.mrf.mxu0 }
 0x153   :  { %v1016_v61 = vpop.f32.mrf.mxu1  ;;  %v1015_v62 = vadd.f32 %v1014_v57, %v974_v59  ;;  %v1019_v63 = vmax.f32 %v1013_v58, 0.0 }
 0x154   :  { %v976_v0 = vpop.f32.mrf.mxu0 }
 0x155   :  { %v1017_v1 = vpop.f32.mrf.mxu1  ;;  %v1020_v2 = vmax.f32 %v1015_v62, 0.0  ;;  %v1021_v4 = vpack.c.bf16 %v1019_v63, %v1019_v63 }
 0x157   :  { %v1022_v3 = vpack.c.bf16 %v1020_v2, %v1020_v2 }
 0x159   :  { %1190 = vmatprep.mubr.bf16.mxu0 %v1022_v3 }
 0x15a   :  { %1191 = vmatmul.mubr.bf16.vlgmr.msra.gmra.mxu0 %v1021_v4 }
 0x21a   :  { %v1500_v8 = vpop.f32.mrf.mxu0 }
 0x21c   :  { %v1501_v10 = vpop.f32.mrf.mxu0 }
 0x21d   :  { %v1502_v11 = vadd.f32 %v1501_v10, %v1500_v8 }
 0x21e   :  { %v1503_v12 = vpop.f32.mrf.mxu0 }
 0x21f   :  { %v1193_v13 = vadd.f32 %v1502_v11, %v1458_v9 }
 0x220   :  { %v1504_v14 = vpop.f32.mrf.mxu0 }
 0x221   :  { %v1198_v15 = vmax.f32 %v1193_v13, 0.0 }
 0x223   :  { %v1199_v16 = vpack.c.bf16 %v1198_v15, %v1198_v15  ;;  %1312 = vst [vmem:[%s1958_s8] sm:$0xff] %v1198_v15 }
 0x225   :  { %1532 = vmatmul.mubr.bf16.vlgmr.msra.gmra.mxu1 %v1199_v16 }
 0x2e5   :  { %v1305_v18 = vpop.f32.mrf.mxu1 }
 0x2e6   :  { %v1306_v19 = vadd.f32 %v1475_v17, %v1305_v18 }
 0x2e7   :  { %v1533_v20 = vpop.f32.mrf.mxu1 }
 0x2e8   :  { %1311 = vst [vmem:[%s1957_s7] sm:$0xff] %v1306_v19 }
 0x2e9   :  { %v1308_v21 = vpop.f32.mrf.mxu1 }
 0x2eb   :  { %v1534_v22 = vpop.f32.mrf.mxu1 }
 0x2ec   :  { %1321 = vsyncpa [#allocation3], 1 }

</bundles_post_ra>
